<compile_context>
chip_gen: v7x
topology: tpu7x:2x2x1
jax: 0.10.0
libtpu: 0.0.40
codegen_flags: <defaults>
</compile_context>

<pallas_src>
import jax
import jax.numpy as jnp
from jax.experimental import pallas as pl
from jax.experimental.pallas import tpu as pltpu


def _round_up(n, m):
    return ((n + m - 1) // m) * m


def mini_nn_kernel(x_ref, w1t_ref, w2t_ref, b_ref, o_ref):
    # fc1: h = x @ W1t + b1   (W1t is (in, out) — already transposed in wrapper)
    x = x_ref[...]
    h = jnp.dot(x, w1t_ref[...], preferred_element_type=jnp.float32)
    h = h + b_ref[0:1, :]                 # (1, Dp) broadcasts over batch rows
    # ReLU (f32 elementwise — keep f32 for the v5e VPU path)
    h = jnp.maximum(h, 0.0)
    # fc2: y = h @ W2t + b2
    y = jnp.dot(h.astype(w2t_ref.dtype), w2t_ref[...],
                preferred_element_type=jnp.float32)
    y = y + b_ref[1:2, :]
    o_ref[...] = y.astype(o_ref.dtype)


def mini_nn_forward(x, w1, b1, w2, b2, *, tb=256):
    """x: (B, D); w1, w2: (D, D) PyTorch (out, in) layout; b1, b2: (D,) or (1, D)."""
    B, D = x.shape
    dt = x.dtype

    # Lane-dense feature dim; sublane-aligned batch tile.
    Dp = _round_up(D, 128)
    B8 = _round_up(B, 8)
    TB = min(tb, B8)
    Bp = _round_up(B8, TB)

    # Zero-pad and pre-transpose weights once in the wrapper (one-time XLA ops).
    xp = jnp.zeros((Bp, Dp), dt).at[:B, :D].set(x)
    w1t = jnp.zeros((Dp, Dp), w1.dtype).at[:D, :D].set(w1.T)   # (in, out)
    w2t = jnp.zeros((Dp, Dp), w2.dtype).at[:D, :D].set(w2.T)   # (in, out)
    b = (jnp.zeros((2, Dp), dt)
         .at[0, :D].set(jnp.reshape(b1, (-1,)))
         .at[1, :D].set(jnp.reshape(b2, (-1,))))

    # VMEM budget: double-buffered x/out tiles + resident weights + biases.
    itemsize = jnp.dtype(dt).itemsize
    vmem_need = itemsize * (2 * TB * Dp        # x (double-buffered)
                            + 2 * TB * Dp      # out (double-buffered)
                            + 2 * 2 * Dp * Dp  # w1t, w2t
                            + 2 * 2 * Dp)      # packed biases
    vmem_limit = int(min(96 * 1024 * 1024, max(2 * vmem_need, 8 * 1024 * 1024)))

    out_padded = pl.pallas_call(
        mini_nn_kernel,
        out_shape=jax.ShapeDtypeStruct((Bp, Dp), dt),
        grid_spec=pltpu.PrefetchScalarGridSpec(
            num_scalar_prefetch=0,
            grid=(Bp // TB,),
            in_specs=[
                pl.BlockSpec((TB, Dp), lambda i: (i, 0)),   # x  (pipelined)
                pl.BlockSpec((Dp, Dp), lambda i: (0, 0)),   # w1t (resident)
                pl.BlockSpec((Dp, Dp), lambda i: (0, 0)),   # w2t (resident)
                pl.BlockSpec((2, Dp), lambda i: (0, 0)),    # packed b1/b2
            ],
            out_specs=pl.BlockSpec((TB, Dp), lambda i: (i, 0)),
        ),
        compiler_params=pltpu.CompilerParams(
            dimension_semantics=("parallel",),
            vmem_limit_bytes=vmem_limit,
        ),
    )(xp, w1t, w2t, b)

    return out_padded[:B, :D]


def reference_forward(x, w1, b1, w2, b2):
    h = jnp.maximum(x @ w1.T + jnp.reshape(b1, (1, -1)), 0.0)
    return h @ w2.T + jnp.reshape(b2, (1, -1))


if __name__ == "__main__":
    B, D = 8, 32
    key = jax.random.PRNGKey(0)
    kx, kw1, kb1, kw2, kb2 = jax.random.split(key, 5)

    # Deterministic synthetic params (PyTorch nn.Linear shapes: (D, D), (D,))
    x = jax.random.normal(kx, (B, D), dtype=jnp.float32)
    bound = 1.0 / (D ** 0.5)
    w1 = jax.random.uniform(kw1, (D, D), jnp.float32, -bound, bound)
    b1 = jax.random.uniform(kb1, (D,), jnp.float32, -bound, bound)
    w2 = jax.random.uniform(kw2, (D, D), jnp.float32, -bound, bound)
    b2 = jax.random.uniform(kb2, (D,), jnp.float32, -bound, bound)

    out = mini_nn_forward(x, w1, b1, w2, b2)
    jax.block_until_ready(out)

    ref = reference_forward(x, w1, b1, w2, b2)
    assert out.shape == (B, D)
    assert jnp.allclose(out, ref, atol=1e-5, rtol=1e-5)

    print("KERNEL_OK")
</pallas_src>

<mosaic_0001>
module attributes {stable_mosaic.version = 11 : i64} {
  func.func @mini_nn_kernel(%arg0: i32, %arg1: memref<8x128xf32, #tpu.memory_space<vmem>>, %arg2: memref<128x128xf32, #tpu.memory_space<vmem>>, %arg3: memref<128x128xf32, #tpu.memory_space<vmem>>, %arg4: memref<2x128xf32, #tpu.memory_space<vmem>>, %arg5: memref<8x128xf32, #tpu.memory_space<vmem>>) attributes {dimension_semantics = [#tpu.dimension_semantics<parallel>], iteration_bounds = array<i64: 1>, scalar_prefetch = 0 : i64, scratch_operands = 0 : i64, tpu.core_type = #tpu.core_type<tc>, window_params = [{transform_indices = @transform_0, window_bounds = array<i64: 8, 128>}, {pipeline_mode = #tpu.pipeline_mode<synchronous>, transform_indices = @transform_1, window_bounds = array<i64: 128, 128>}, {pipeline_mode = #tpu.pipeline_mode<synchronous>, transform_indices = @transform_2, window_bounds = array<i64: 128, 128>}, {pipeline_mode = #tpu.pipeline_mode<synchronous>, transform_indices = @transform_3, window_bounds = array<i64: 2, 128>}, {transform_indices = @transform_4, window_bounds = array<i64: 8, 128>}]} {
    %c0 = arith.constant 0 : index
    %c0_0 = arith.constant 0 : index
    %0 = vector.load %arg1[%c0, %c0_0] : memref<8x128xf32, #tpu.memory_space<vmem>>, vector<8x128xf32>
    %c0_1 = arith.constant 0 : index
    %c0_2 = arith.constant 0 : index
    %1 = vector.load %arg2[%c0_1, %c0_2] : memref<128x128xf32, #tpu.memory_space<vmem>>, vector<128x128xf32>
    %cst = arith.constant dense<0.000000e+00> : vector<8x128xf32>
    %2 = tpu.matmul %0, %1, %cst {dimension_numbers = #tpu.dot_dimension_numbers<[1], [0], [0], [1], [0, 0, 1, 1], [], []>} : vector<8x128xf32>, vector<128x128xf32>, vector<8x128xf32> -> vector<8x128xf32>
    %c0_3 = arith.constant 0 : index
    %c0_4 = arith.constant 0 : index
    %3 = vector.load %arg4[%c0_3, %c0_4] : memref<2x128xf32, #tpu.memory_space<vmem>>, vector<1x128xf32>
    %4 = vector.broadcast %3 : vector<1x128xf32> to vector<8x128xf32>
    %5 = arith.addf %2, %4 : vector<8x128xf32>
    %cst_5 = arith.constant 0.000000e+00 : f32
    %6 = vector.broadcast %cst_5 : f32 to vector<8x128xf32>
    %7 = arith.maximumf %5, %6 : vector<8x128xf32>
    %c0_6 = arith.constant 0 : index
    %c0_7 = arith.constant 0 : index
    %8 = vector.load %arg3[%c0_6, %c0_7] : memref<128x128xf32, #tpu.memory_space<vmem>>, vector<128x128xf32>
    %cst_8 = arith.constant dense<0.000000e+00> : vector<8x128xf32>
    %9 = tpu.matmul %7, %8, %cst_8 {dimension_numbers = #tpu.dot_dimension_numbers<[1], [0], [0], [1], [0, 0, 1, 1], [], []>} : vector<8x128xf32>, vector<128x128xf32>, vector<8x128xf32> -> vector<8x128xf32>
    %c1 = arith.constant 1 : index
    %c0_9 = arith.constant 0 : index
    %10 = vector.load %arg4[%c1, %c0_9] : memref<2x128xf32, #tpu.memory_space<vmem>>, vector<1x128xf32>
    %11 = vector.broadcast %10 : vector<1x128xf32> to vector<8x128xf32>
    %12 = arith.addf %9, %11 : vector<8x128xf32>
    %c0_10 = arith.constant 0 : index
    %c0_11 = arith.constant 0 : index
    %13 = vector.load %arg5[%c0_10, %c0_11] : memref<8x128xf32, #tpu.memory_space<vmem>>, vector<8x128xf32>
    tpu.vector_store %arg5[%c0_10, %c0_11], %12 {strides = array<i32>} : memref<8x128xf32, #tpu.memory_space<vmem>>, vector<8x128xf32>,
    return
  }
  func.func @transform_0(%arg0: i32) -> (i32, i32) {
    %c0_i32 = arith.constant 0 : i32
    %c0_i32_0 = arith.constant 0 : i32
    return %arg0, %c0_i32 : i32, i32
  }
  func.func @transform_1(%arg0: i32) -> (i32, i32) {
    %c0_i32 = arith.constant 0 : i32
    %c0_i32_0 = arith.constant 0 : i32
    %c0_i32_1 = arith.constant 0 : i32
    return %c0_i32, %c0_i32_0 : i32, i32
  }
  func.func @transform_2(%arg0: i32) -> (i32, i32) {
    %c0_i32 = arith.constant 0 : i32
    %c0_i32_0 = arith.constant 0 : i32
    %c0_i32_1 = arith.constant 0 : i32
    return %c0_i32, %c0_i32_0 : i32, i32
  }
  func.func @transform_3(%arg0: i32) -> (i32, i32) {
    %c0_i32 = arith.constant 0 : i32
    %c0_i32_0 = arith.constant 0 : i32
    %c0_i32_1 = arith.constant 0 : i32
    return %c0_i32, %c0_i32_0 : i32, i32
  }
  func.func @transform_4(%arg0: i32) -> (i32, i32) {
    %c0_i32 = arith.constant 0 : i32
    %c0_i32_0 = arith.constant 0 : i32
    return %arg0, %c0_i32 : i32, i32
  }
}

</mosaic_0001>

<bundles_post_ra>
// kernel: tpu_custom_call.1
= control target key start
LH: loop header
LB: loop body
LE: loop exit
PB: predicated region body
PF: predicated region fallthrough
CT: control target
= control target key end

     0   :  { %9 = vsyncpa [#allocation3], 0  ;;  %s625_s0 = inlined_call_operand.hbm [shape: f32[8,128], index: 0, kind: input, shape index: {}]   ;;  %s626_s1 = inlined_call_operand.hbm [shape: f32[128,128], index: 1, kind: input, shape index: {}]   ;;  %s627_s2 = inlined_call_operand.hbm [shape: f32[128,128], index: 2, kind: input, shape index: {}]   ;;  %s628_s3 = inlined_call_operand.vmem [shape: f32[2,128], index: 3, kind: input, shape index: {}]   ;;  %s629_s4 = inlined_call_operand.hbm [shape: f32[8,128], index: 4, kind: output, shape index: {}]  }
   0x1   :  { %10 = vsyncpa [#allocation6], 0 }
   0x2   :  { %11 = vsyncpa [#allocation4], 0  ;;  %s515_s15 = smov [#allocation5]   ;;  %s421_s19 = scalar_lea.hbm %s626_s1, 2048 }
   0x3   :  { %s27_s16 = sshll.u32 %s515_s15, 4  ;;  %p422_p0 = scmp.ne.s32.totalorder %s626_s1, %s421_s19  ;;  %s28_s16 = int_to_ptr.vmem [resolvable:$true] %s27_s16 }
   0x4   :  { %p425_p1 = scmp.lt.u32.totalorder %s421_s19, %s626_s1 }
   0x6   :  { %p427_p2 = pnand %p425_p1, %p422_p0 }
   0x8   :  { %430 = shalt.err (!%p427_p2)
}
   0x9   :  { %s431_s24 = scalar_lea.vmem %s28_s16, 2048  ;;  %p436_p4 = scmp.lt.s32.totalorder %s28_s16, %s28_s16 }
   0xa   :  { %p432_p3 = scmp.ne.s32.totalorder %s28_s16, %s431_s24  ;;  %p437_p5 = scmp.lt.s32.totalorder %s431_s24, %s431_s24 }
   0xc   :  { %p438_p6 = por %p437_p5, %p436_p4 }
   0xe   :  { %p439_p7 = pnand %p438_p6, %p432_p3 }
  0x10   :  { %442 = shalt.err (!%p439_p7)
}
  0x11   :  { %s516_s25 = smov 128   ;;  %s517_s26 = smov 8  }
  0x12   :  { %33 = dma.hbm_to_vmem [thread:$0]  %s626_s1, 2048, %s28_s16, [#allocation6], %s516_s25, %s516_s25, %s517_s26  }
  0x13   :  { %s518_s29 = smov [#allocation2]   ;;  %s519_s5 = smov [#allocation7]  }
  0x14   :  { %s18_s30 = sshll.u32 %s518_s29, 4  ;;  %s39_s6 = sshll.u32 %s519_s5, 4  ;;  %s19_s30 = int_to_ptr.vmem [resolvable:$true] %s18_s30  ;;  %s40_s6 = int_to_ptr.vmem [resolvable:$true] %s39_s6 }
  0x15   :  { %s443_s9 = scalar_lea.hbm %s625_s0, 128 }
  0x16   :  { %p444_p8 = scmp.ne.s32.totalorder %s625_s0, %s443_s9  ;;  %p447_p9 = scmp.lt.u32.totalorder %s443_s9, %s625_s0 }
  0x18   :  { %p449_p10 = pnand %p447_p9, %p444_p8 }
  0x1a   :  { %452 = shalt.err (!%p449_p10)
}
  0x1b   :  { %s453_s1 = scalar_lea.vmem %s19_s30, 128  ;;  %p458_p12 = scmp.lt.s32.totalorder %s19_s30, %s19_s30 }
  0x1c   :  { %p454_p11 = scmp.ne.s32.totalorder %s19_s30, %s453_s1  ;;  %p459_p13 = scmp.lt.s32.totalorder %s453_s1, %s453_s1 }
  0x1e   :  { %p460_p0 = por %p459_p13, %p458_p12 }
  0x20   :  { %p461_p1 = pnand %p460_p0, %p454_p11 }
  0x22   :  { %464 = shalt.err (!%p461_p1)
}
  0x23   :  { %21 = dma.hbm_to_vmem [thread:$0]  %s625_s0, 128, %s19_s30, [#allocation3]  }
  0x24   :  { %s465_s18 = scalar_lea.hbm %s627_s2, 2048 }
  0x25   :  { %p466_p2 = scmp.ne.s32.totalorder %s627_s2, %s465_s18  ;;  %p469_p3 = scmp.lt.u32.totalorder %s465_s18, %s627_s2 }
  0x27   :  { %p471_p4 = pnand %p469_p3, %p466_p2 }
  0x29   :  { %474 = shalt.err (!%p471_p4)
}
  0x2a   :  { %s475_s23 = scalar_lea.vmem %s40_s6, 2048  ;;  %p480_p6 = scmp.lt.s32.totalorder %s40_s6, %s40_s6 }
  0x2b   :  { %p476_p5 = scmp.ne.s32.totalorder %s40_s6, %s475_s23  ;;  %p481_p7 = scmp.lt.s32.totalorder %s475_s23, %s475_s23 }
  0x2d   :  { %p482_p8 = por %p481_p7, %p480_p6 }
  0x2f   :  { %p483_p9 = pnand %p482_p8, %p476_p5 }
  0x31   :  { %486 = shalt.err (!%p483_p9)
}
  0x32   :  { %45 = dma.hbm_to_vmem [thread:$0]  %s627_s2, 2048, %s40_s6, [#allocation6], %s516_s25, %s516_s25, %s517_s26  }
  0x33   :  { %509 = dma.done.wait [#allocation3], 128  }
  0x34   :  { %510 = vsyncadd [#allocation3], 4294967168 }
  0x35   :  { %511 = dma.done.wait [#allocation6], 4096  }
  0x36   :  { %512 = vsyncadd [#allocation6], 4294963200  ;;  %v520_v0 = vmov 0.0|0.0   ;;  %vm521_vm0 = vmmov 0   ;;  %v522_v1 = vmov 0.0   ;;  %v58_v2 = vld [vmem:[#allocation5] sm:$0xff] }
  0x37   :  { %364 = vmatprep.subr.bf16.mxu0 %v520_v0  ;;  %326 = vmatprep.mubr.msk.f32.mxu0 %vm521_vm0, %v522_v1  ;;  %v59_v3 = vld [vmem:[#allocation5 + $0x8] sm:$0xff]  ;;  %v60_v4 = vld [vmem:[#allocation5 + $0x10] sm:$0xff]  ;;  %v61_v6 = vld [vmem:[#allocation5 + $0x18] sm:$0xff]  ;;  %s523_s28 = smov [#allocation8]  }
  0x38   :  { %388 = vmatprep.subr.bf16.mxu1 %v520_v0  ;;  %361 = vmatprep.mubr.msk.f32.mxu1 %vm521_vm0, %v522_v1  ;;  %v365_v5 = vpack.c.bf16 %v59_v3, %v58_v2  ;;  %v368_v7 = vpack.c.bf16 %v61_v6, %v60_v4  ;;  %v62_v8 = vld [vmem:[#allocation5 + $0x20] sm:$0xff]  ;;  %v63_v9 = vld [vmem:[#allocation5 + $0x28] sm:$0xff]  ;;  %v152_v12 = vld [vmem:[#allocation7 + $0x10] sm:$0xff]  ;;  %s248_s29 = sshll.u32 %s523_s28, 4  ;;  %s249_s29 = int_to_ptr.vmem [resolvable:$true] %s248_s29 }
  0x39   :  { %v150_v10 = vld [vmem:[#allocation7] sm:$0xff]  ;;  %v151_v11 = vld [vmem:[#allocation7 + $0x8] sm:$0xff]  ;;  %v153_v13 = vld [vmem:[#allocation7 + $0x18] sm:$0xff]  ;;  %v371_v14 = vpack.c.bf16 %v63_v9, %v62_v8  ;;  %s487_s30 = scalar_lea.vmem %s249_s29, 128  ;;  %p492_p11 = scmp.lt.s32.totalorder %s249_s29, %s249_s29 }
  0x3a   :  { %366 = vmatpush3.bf16.msra.mxu0 %v365_v5  ;;  %v389_v15 = vpack.c.bf16 %v151_v11, %v150_v10  ;;  %v64_v16 = vld [vmem:[#allocation5 + $0x30] sm:$0xff]  ;;  %v65_v17 = vld [vmem:[#allocation5 + $0x38] sm:$0xff]  ;;  %v392_v18 = vpack.c.bf16 %v153_v13, %v152_v12  ;;  %v154_v19 = vld [vmem:[#allocation7 + $0x20] sm:$0xff]  ;;  %p488_p10 = scmp.ne.s32.totalorder %s249_s29, %s487_s30  ;;  %p493_p12 = scmp.lt.s32.totalorder %s487_s30, %s487_s30 }
  0x3b   :  { %367 = vmatprep.subr.bf16.mxu0 %v520_v0  ;;  %v155_v20 = vld [vmem:[#allocation7 + $0x28] sm:$0xff]  ;;  %v374_v21 = vpack.c.bf16 %v65_v17, %v64_v16  ;;  %v66_v22 = vld [vmem:[#allocation5 + $0x40] sm:$0xff]  ;;  %v156_v25 = vld [vmem:[#allocation7 + $0x30] sm:$0xff] }
  0x3c   :  { %390 = vmatpush3.bf16.msra.mxu1 %v389_v15  ;;  %v67_v23 = vld [vmem:[#allocation5 + $0x48] sm:$0xff]  ;;  %v395_v24 = vpack.c.bf16 %v155_v20, %v154_v19  ;;  %v157_v26 = vld [vmem:[#allocation7 + $0x38] sm:$0xff]  ;;  %v68_v28 = vld [vmem:[#allocation5 + $0x50] sm:$0xff]  ;;  %p494_p13 = por %p493_p12, %p492_p11 }
  0x3d   :  { %391 = vmatprep.subr.bf16.mxu1 %v520_v0  ;;  %v377_v27 = vpack.c.bf16 %v67_v23, %v66_v22  ;;  %v69_v29 = vld [vmem:[#allocation5 + $0x58] sm:$0xff]  ;;  %v398_v30 = vpack.c.bf16 %v157_v26, %v156_v25  ;;  %v158_v31 = vld [vmem:[#allocation7 + $0x40] sm:$0xff]  ;;  %v159_v32 = vld [vmem:[#allocation7 + $0x48] sm:$0xff] }
  0x3e   :  { %369 = vmatpush3.bf16.msra.mxu0 %v368_v7  ;;  %v380_v33 = vpack.c.bf16 %v69_v29, %v68_v28  ;;  %v70_v34 = vld [vmem:[#allocation5 + $0x60] sm:$0xff]  ;;  %v71_v35 = vld [vmem:[#allocation5 + $0x68] sm:$0xff]  ;;  %v401_v36 = vpack.c.bf16 %v159_v32, %v158_v31  ;;  %v160_v37 = vld [vmem:[#allocation7 + $0x50] sm:$0xff]  ;;  %p495_p0 = pnand %p494_p13, %p488_p10 }
  0x3f   :  { %370 = vmatprep.subr.bf16.mxu0 %v520_v0  ;;  %v161_v38 = vld [vmem:[#allocation7 + $0x58] sm:$0xff]  ;;  %v383_v39 = vpack.c.bf16 %v71_v35, %v70_v34  ;;  %v72_v40 = vld [vmem:[#allocation5 + $0x70] sm:$0xff]  ;;  %v162_v43 = vld [vmem:[#allocation7 + $0x60] sm:$0xff] }
  0x40   :  { %393 = vmatpush3.bf16.msra.mxu1 %v392_v18  ;;  %v73_v41 = vld [vmem:[#allocation5 + $0x78] sm:$0xff]  ;;  %v404_v42 = vpack.c.bf16 %v161_v38, %v160_v37  ;;  %v163_v44 = vld [vmem:[#allocation7 + $0x68] sm:$0xff]  ;;  %v164_v48 = vld [vmem:[#allocation7 + $0x70] sm:$0xff] }
  0x41   :  { %394 = vmatprep.subr.bf16.mxu1 %v520_v0  ;;  %v386_v45 = vpack.c.bf16 %v73_v41, %v72_v40  ;;  %v407_v46 = vpack.c.bf16 %v163_v44, %v162_v43  ;;  %v57_v47 = vld [vmem:[#allocation2] sm:$0xff] }
  0x42   :  { %372 = vmatpush3.bf16.msra.mxu0 %v371_v14  ;;  %v165_v49 = vld [vmem:[#allocation7 + $0x78] sm:$0xff] }
  0x43   :  { %373 = vmatprep.subr.bf16.mxu0 %v520_v0  ;;  %v410_v50 = vpack.c.bf16 %v165_v49, %v164_v48  ;;  %v258_v51 = vld [vmem:[%s628_s3] ss:$0 sm:$0xff]  ;;  %v259_v56 = vld [vmem:[%s628_s3 + $0x1] ss:$0 sm:$0xff] }
  0x44   :  { %396 = vmatpush3.bf16.msra.mxu1 %v395_v24 }
  0x45   :  { %397 = vmatprep.subr.bf16.mxu1 %v520_v0 }
  0x46   :  { %375 = vmatpush3.bf16.msra.mxu0 %v374_v21 }
  0x47   :  { %376 = vmatprep.subr.bf16.mxu0 %v520_v0 }
  0x48   :  { %399 = vmatpush3.bf16.msra.mxu1 %v398_v30 }
  0x49   :  { %400 = vmatprep.subr.bf16.mxu1 %v520_v0 }
  0x4a   :  { %378 = vmatpush3.bf16.msra.mxu0 %v377_v27 }
  0x4b   :  { %379 = vmatprep.subr.bf16.mxu0 %v520_v0 }
  0x4c   :  { %402 = vmatpush3.bf16.msra.mxu1 %v401_v36 }
  0x4d   :  { %403 = vmatprep.subr.bf16.mxu1 %v520_v0 }
  0x4e   :  { %381 = vmatpush3.bf16.msra.mxu0 %v380_v33 }
  0x4f   :  { %382 = vmatprep.subr.bf16.mxu0 %v520_v0 }
  0x50   :  { %405 = vmatpush3.bf16.msra.mxu1 %v404_v42 }
  0x51   :  { %406 = vmatprep.subr.bf16.mxu1 %v520_v0 }
  0x52   :  { %384 = vmatpush3.bf16.msra.mxu0 %v383_v39 }
  0x53   :  { %385 = vmatprep.subr.bf16.mxu0 %v520_v0 }
  0x54   :  { %408 = vmatpush3.bf16.msra.mxu1 %v407_v46 }
  0x55   :  { %409 = vmatprep.subr.bf16.mxu1 %v520_v0 }
  0x56   :  { %387 = vmatpush3.bf16.msra.mxu0 %v386_v45 }
  0x58   :  { %411 = vmatpush3.bf16.msra.mxu1 %v410_v50 }
  0x59   :  { %327 = vmatmul.mubr.f32.vlgmr.msra.gmra.mrb[0].mxu0 %v57_v47 }
 0x12c   :  { %v145_v52 = vpop.f32.mrb[0].mxu0 }
 0x12d   :  { %v146_v53 = vadd.f32 %v258_v51, %v145_v52  ;;  %v328_v54 = vpop.f32.mrb[1].mxu0 }
 0x12f   :  { %v149_v55 = vmax.f32 %v146_v53, 0.0 }
 0x131   :  { %362 = vmatmul.mubr.f32.vlgmr.msra.gmra.mrb[0].mxu1 %v149_v55 }
 0x204   :  { %v237_v57 = vpop.f32.mrb[0].mxu1 }
 0x205   :  { %v238_v58 = vadd.f32 %v259_v56, %v237_v57  ;;  %v363_v59 = vpop.f32.mrb[1].mxu1 }
 0x207   :  { %241 = vst [vmem:[#allocation8] sm:$0xff] %v238_v58 }
 0x208   :  { %498 = shalt.err (!%p495_p0)
}
 0x209   :  { %s499_s7 = scalar_lea.hbm %s629_s4, 128 }
 0x20a   :  { %p500_p1 = scmp.ne.s32.totalorder %s629_s4, %s499_s7  ;;  %p503_p2 = scmp.lt.u32.totalorder %s499_s7, %s629_s4 }
 0x20c   :  { %p505_p3 = pnand %p503_p2, %p500_p1 }
 0x20e   :  { %508 = shalt.err (!%p505_p3)
}
 0x20f   :  { %251 = dma.vmem_to_hbm [thread:$0]  %s249_s29, 128, %s629_s4, [#allocation4]  }
 0x210   :  { %513 = dma.done.wait [#allocation4], 128  }
 0x211   :  { %514 = vsyncadd [#allocation4], 4294967168 }
 0x212   :  { %255 = vsyncpa [#allocation3], 1 }
 0x213   :  { %256 = vsyncpa [#allocation6], 1 }
 0x214   :  { %257 = vsyncpa [#allocation4], 1 }

</bundles_post_ra>
